<compile_context>
chip_gen: v5e
topology: v5e:2x2
jax: 0.10.0
libtpu: 0.0.40
codegen_flags: <defaults>
</compile_context>

<pallas_src>
import functools

import numpy as np
import jax
import jax.numpy as jnp
from jax.experimental import pallas as pl
from jax.experimental.pallas import tpu as pltpu


# ----------------------------------------------------------------------------
# Bilinear interpolation matrix (PyTorch align_corners=False rule), computed
# with numpy at trace time so it becomes a compile-time constant.
# ----------------------------------------------------------------------------
def _interp_matrix_np(out_size, in_size):
    dst = np.arange(out_size, dtype=np.float64)
    scale = in_size / out_size
    src = np.maximum((dst + 0.5) * scale - 0.5, 0.0)
    i0 = np.clip(np.floor(src).astype(np.int64), 0, in_size - 1)
    i1 = np.minimum(i0 + 1, in_size - 1)
    frac = src - i0
    m = np.zeros((out_size, in_size), np.float32)
    rows = np.arange(out_size)
    m[rows, i0] += (1.0 - frac)
    m[rows, i1] += frac
    return m


# ----------------------------------------------------------------------------
# Pallas kernel: whole batch in one invocation; all tensors channel-major
# (channels on sublanes, flattened pixels on lanes).
# ----------------------------------------------------------------------------
def _lraspp_kernel(low_ref, high_ref, m_ref, w_hi_stk_ref, w_low_ref, w_high_ref,
                   vec_ref, fused_ref, *, n, ic):
    # Shared constants: loaded once (no grid => single invocation).
    m = m_ref[...]                  # (Ph, Pl)   kron(A, B)^T upsample matrix
    w_hi_stk = w_hi_stk_ref[...]    # (2*IC, Ch) [cbr(BN folded) ; scale] stacked
    w_low = w_low_ref[...]          # (NCp1, Cl) fused low classifier (cls + sal)
    w_high = w_high_ref[...]        # (NCp1, IC) fused high classifier (cls + sal)
    vec = vec_ref[...]              # (IC + NCp1, 1) packed small constants
    shift = vec[:ic, :]             # (IC, 1)    BN shift (beta - mean * gamma/std)
    b_sum = vec[ic:, :]             # (NCp1, 1)  low + high biases, pre-summed

    # Tiny static batch loop inside one grid step (per-step overhead amortized).
    for b in range(n):
        high = high_ref[b]          # (Ch, Ph)
        low = low_ref[b]            # (Cl, Pl)

        # cbr + scale branches in ONE matmul (avg-pool commutes with 1x1 conv).
        z = jnp.dot(w_hi_stk, high, preferred_element_type=jnp.float32)  # (2IC, Ph)
        x = jnp.maximum(z[:ic, :] + shift, 0.0)                          # (IC, Ph)
        s = jax.nn.sigmoid(jnp.mean(z[ic:, :], axis=1, keepdims=True))   # (IC, 1)
        x = x * s

        # Classify BEFORE upsampling (1x1 conv commutes with bilinear interp),
        # then a single (NCp1, Ph) @ (Ph, Pl) MXU matmul does the full upsample.
        y = jnp.dot(w_high, x, preferred_element_type=jnp.float32)       # (NCp1, Ph)
        up = jnp.dot(y, m, preferred_element_type=jnp.float32)           # (NCp1, Pl)

        res = jnp.dot(w_low, low, preferred_element_type=jnp.float32) + b_sum + up
        fused_ref[b] = res          # one lane-dense (NCp1, 256-lane) store


# ----------------------------------------------------------------------------
# Wrapper: parameter folding + pallas_call (no HBM transposes, 7 DMA streams)
# ----------------------------------------------------------------------------
def lraspp_forward(params, low_nchw, high_nchw):
    N, Cl, Hl, Wl = low_nchw.shape
    _, Ch, Hh, Wh = high_nchw.shape
    Pl, Ph = Hl * Wl, Hh * Wh
    IC = params['w_cbr'].shape[1]
    NC = params['w_low_cls'].shape[1]
    NCp1 = NC + 1

    # NCHW -> (N, C, H*W): contiguous view, no transpose.
    low2 = low_nchw.reshape(N, Cl, Pl).astype(jnp.float32)
    high2 = high_nchw.reshape(N, Ch, Ph).astype(jnp.float32)

    # Fold eval-mode BatchNorm scale into the cbr weight; keep per-channel shift.
    inv = 1.0 / jnp.sqrt(params['bn_var'] + params['bn_eps'])
    g = params['bn_gamma'] * inv
    w_cbr_bn_t = (params['w_cbr'] * g[None, :]).T                         # (IC, Ch)
    bn_shift = (params['bn_beta'] - params['bn_mean'] * g).reshape(IC, 1)
    w_scale_t = params['w_scale'].T                                       # (IC, Ch)
    w_hi_stk = jnp.concatenate([w_cbr_bn_t, w_scale_t], axis=0)           # (2IC, Ch)

    # Fuse 'out' and 'sal' heads along the output-channel axis; pre-sum biases.
    w_low_t = jnp.concatenate([params['w_low_cls'], params['w_low_sal']], axis=1).T    # (NCp1, Cl)
    w_high_t = jnp.concatenate([params['w_high_cls'], params['w_high_sal']], axis=1).T  # (NCp1, IC)
    b_sum = (jnp.concatenate([params['b_low_cls'], params['b_low_sal']])
             + jnp.concatenate([params['b_high_cls'], params['b_high_sal']])).reshape(NCp1, 1)
    vec = jnp.concatenate([bn_shift, b_sum], axis=0)                      # (IC+NCp1, 1)

    # Full bilinear upsample as one (Ph, Pl) matrix: M = kron(A, B)^T.
    A = _interp_matrix_np(Hl, Hh)                                         # (Hl, Hh)
    B = _interp_matrix_np(Wl, Wh)                                         # (Wl, Wh)
    M = jnp.asarray(np.kron(A, B).T)                                      # (Ph, Pl)
    # TODO(synk): at production resolutions (Ph*Pl*4 bytes large) this kron matrix
    # exceeds VMEM (esp. v7x 64 MiB); switch to a separable two-matmul upsample there.

    kernel = functools.partial(_lraspp_kernel, n=N, ic=IC)

    vmem = pl.BlockSpec(memory_space=pltpu.MemorySpace.VMEM)   # whole array in VMEM
    fused = pl.pallas_call(
        kernel,
        out_shape=jax.ShapeDtypeStruct((N, NCp1, Pl), jnp.float32),
        in_specs=[vmem] * 7,
        out_specs=vmem,
    )(low2, high2, M, w_hi_stk, w_low_t, w_high_t, vec)

    # Cheap wrapper-side split + free reshape back to NCHW (no transpose).
    out = fused[:, :NC, :].reshape(N, NC, Hl, Wl)
    sal = fused[:, NC:, :].reshape(N, 1, Hl, Wl)
    return {'out': out, 'sal': sal}


# ----------------------------------------------------------------------------
# Pure-JAX reference (NCHW, same math as the PyTorch module)
# ----------------------------------------------------------------------------
def lraspp_reference(params, low_nchw, high_nchw):
    high = high_nchw.astype(jnp.float32)
    low = low_nchw.astype(jnp.float32)
    Hl, Wl = low.shape[2], low.shape[3]
    Hh, Wh = high.shape[2], high.shape[3]

    x = jnp.einsum('nchw,cd->ndhw', high, params['w_cbr'])
    inv = 1.0 / jnp.sqrt(params['bn_var'] + params['bn_eps'])
    x = ((x - params['bn_mean'][None, :, None, None]) * inv[None, :, None, None]
         * params['bn_gamma'][None, :, None, None] + params['bn_beta'][None, :, None, None])
    x = jnp.maximum(x, 0.0)

    pooled = jnp.mean(high, axis=(2, 3))                        # (N, Ch)
    s = jax.nn.sigmoid(pooled @ params['w_scale'])              # (N, IC)
    x = x * s[:, :, None, None]

    A = jnp.asarray(_interp_matrix_np(Hl, Hh))
    B = jnp.asarray(_interp_matrix_np(Wl, Wh))
    xu = jnp.einsum('ip,ndpq,jq->ndij', A, x, B)                # (N, IC, Hl, Wl)

    def cls(w_low, b_low, w_high, b_high):
        return (jnp.einsum('nchw,ck->nkhw', low, w_low) + b_low[None, :, None, None]
                + jnp.einsum('ndhw,dk->nkhw', xu, w_high) + b_high[None, :, None, None])

    out = cls(params['w_low_cls'], params['b_low_cls'],
              params['w_high_cls'], params['b_high_cls'])
    sal = cls(params['w_low_sal'], params['b_low_sal'],
              params['w_high_sal'], params['b_high_sal'])
    return {'out': out, 'sal': sal}


# ----------------------------------------------------------------------------
# Main
# ----------------------------------------------------------------------------
if __name__ == "__main__":
    # Small shapes consistent with the module.
    N = 2
    low_channels, high_channels = 8, 16
    num_classes, inter_channels = 6, 32
    Hl = Wl = 16      # 'low' feature spatial size (also the interpolate target)
    Hh = Wh = 8       # 'high' feature spatial size

    key = jax.random.PRNGKey(0)
    keys = jax.random.split(key, 12)

    # Deterministic synthetic parameters (1x1-conv weights stored as (Cin, Cout)).
    params = {
        'w_cbr': 0.1 * jax.random.normal(keys[0], (high_channels, inter_channels), jnp.float32),
        'bn_gamma': 1.0 + 0.1 * jax.random.normal(keys[1], (inter_channels,), jnp.float32),
        'bn_beta': 0.05 * jax.random.normal(keys[2], (inter_channels,), jnp.float32),
        'bn_mean': 0.1 * jax.random.normal(keys[3], (inter_channels,), jnp.float32),
        'bn_var': jax.random.uniform(keys[4], (inter_channels,), jnp.float32, 0.5, 1.5),
        'bn_eps': 1e-5,
        'w_scale': 0.1 * jax.random.normal(keys[5], (high_channels, inter_channels), jnp.float32),
        'w_low_cls': 0.1 * jax.random.normal(keys[6], (low_channels, num_classes), jnp.float32),
        'b_low_cls': 0.05 * jax.random.normal(keys[7], (num_classes,), jnp.float32),
        'w_high_cls': 0.1 * jax.random.normal(keys[8], (inter_channels, num_classes), jnp.float32),
        'b_high_cls': 0.05 * jax.random.normal(keys[9], (num_classes,), jnp.float32),
        'w_low_sal': 0.1 * jax.random.normal(keys[10], (low_channels, 1), jnp.float32),
        'b_low_sal': jnp.zeros((1,), jnp.float32),
        'w_high_sal': 0.1 * jax.random.normal(keys[11], (inter_channels, 1), jnp.float32),
        'b_high_sal': 0.02 * jnp.ones((1,), jnp.float32),
    }

    # Example inputs in PyTorch NCHW layout.
    in_key_low, in_key_high = jax.random.split(jax.random.PRNGKey(0), 2)
    low_nchw = jax.random.normal(in_key_low, (N, low_channels, Hl, Wl), jnp.float32)
    high_nchw = jax.random.normal(in_key_high, (N, high_channels, Hh, Wh), jnp.float32)

    result = lraspp_forward(params, low_nchw, high_nchw)
    jax.block_until_ready(result)

    ref = lraspp_reference(params, low_nchw, high_nchw)
    assert result['out'].shape == (N, num_classes, Hl, Wl)
    assert result['sal'].shape == (N, 1, Hl, Wl)
    assert jnp.allclose(result['out'], ref['out'], atol=1e-4, rtol=1e-4)
    assert jnp.allclose(result['sal'], ref['sal'], atol=1e-4, rtol=1e-4)

    print("KERNEL_OK")
</pallas_src>

<mosaic_0001>
module attributes {stable_mosaic.version = 11 : i64} {
  func.func @_lraspp_kernel(%arg0: memref<2x8x256xf32, #tpu.memory_space<vmem>>, %arg1: memref<2x16x64xf32, #tpu.memory_space<vmem>>, %arg2: memref<64x256xf32, #tpu.memory_space<vmem>>, %arg3: memref<64x16xf32, #tpu.memory_space<vmem>>, %arg4: memref<7x8xf32, #tpu.memory_space<vmem>>, %arg5: memref<7x32xf32, #tpu.memory_space<vmem>>, %arg6: memref<39x1xf32, #tpu.memory_space<vmem>>, %arg7: memref<2x7x256xf32, #tpu.memory_space<vmem>>) attributes {dimension_semantics = [], scalar_prefetch = 0 : i64, scratch_operands = 0 : i64, tpu.core_type = #tpu.core_type<tc>} {
    %c0 = arith.constant 0 : index
    %c0_0 = arith.constant 0 : index
    %0 = vector.load %arg2[%c0, %c0_0] : memref<64x256xf32, #tpu.memory_space<vmem>>, vector<64x256xf32>
    %c0_1 = arith.constant 0 : index
    %c0_2 = arith.constant 0 : index
    %1 = vector.load %arg3[%c0_1, %c0_2] : memref<64x16xf32, #tpu.memory_space<vmem>>, vector<64x16xf32>
    %c0_3 = arith.constant 0 : index
    %c0_4 = arith.constant 0 : index
    %2 = vector.load %arg4[%c0_3, %c0_4] : memref<7x8xf32, #tpu.memory_space<vmem>>, vector<7x8xf32>
    %c0_5 = arith.constant 0 : index
    %c0_6 = arith.constant 0 : index
    %3 = vector.load %arg5[%c0_5, %c0_6] : memref<7x32xf32, #tpu.memory_space<vmem>>, vector<7x32xf32>
    %c0_7 = arith.constant 0 : index
    %c0_8 = arith.constant 0 : index
    %4 = vector.load %arg6[%c0_7, %c0_8] : memref<39x1xf32, #tpu.memory_space<vmem>>, vector<39x1xf32>
    %5 = vector.extract_strided_slice %4 {offsets = [0, 0], sizes = [32, 1], strides = [1, 1]} : vector<39x1xf32> to vector<32x1xf32>
    %6 = vector.extract_strided_slice %4 {offsets = [32, 0], sizes = [7, 1], strides = [1, 1]} : vector<39x1xf32> to vector<7x1xf32>
    %c0_9 = arith.constant 0 : index
    %c0_10 = arith.constant 0 : index
    %c0_11 = arith.constant 0 : index
    %7 = vector.load %arg1[%c0_9, %c0_10, %c0_11] : memref<2x16x64xf32, #tpu.memory_space<vmem>>, vector<1x16x64xf32>
    %8 = vector.shape_cast %7 : vector<1x16x64xf32> to vector<16x64xf32>
    %c0_12 = arith.constant 0 : index
    %c0_13 = arith.constant 0 : index
    %c0_14 = arith.constant 0 : index
    %9 = vector.load %arg0[%c0_12, %c0_13, %c0_14] : memref<2x8x256xf32, #tpu.memory_space<vmem>>, vector<1x8x256xf32>
    %10 = vector.shape_cast %9 : vector<1x8x256xf32> to vector<8x256xf32>
    %cst = arith.constant dense<0.000000e+00> : vector<64x64xf32>
    %11 = tpu.matmul %1, %8, %cst {dimension_numbers = #tpu.dot_dimension_numbers<[1], [0], [0], [1], [0, 0, 1, 1], [], []>} : vector<64x16xf32>, vector<16x64xf32>, vector<64x64xf32> -> vector<64x64xf32>
    %12 = vector.extract_strided_slice %11 {offsets = [0, 0], sizes = [32, 64], strides = [1, 1]} : vector<64x64xf32> to vector<32x64xf32>
    %13 = vector.broadcast %5 : vector<32x1xf32> to vector<32x64xf32>
    %14 = arith.addf %12, %13 : vector<32x64xf32>
    %cst_15 = arith.constant 0.000000e+00 : f32
    %15 = vector.broadcast %cst_15 : f32 to vector<32x64xf32>
    %16 = arith.maximumf %14, %15 : vector<32x64xf32>
    %17 = vector.extract_strided_slice %11 {offsets = [32, 0], sizes = [32, 64], strides = [1, 1]} : vector<64x64xf32> to vector<32x64xf32>
    %cst_16 = arith.constant dense<0.000000e+00> : vector<32xf32>
    %18 = vector.multi_reduction <add>, %17, %cst_16 [1] : vector<32x64xf32> to vector<32xf32>
    %19 = vector.shape_cast %18 : vector<32xf32> to vector<32x1xf32>
    %cst_17 = arith.constant 6.400000e+01 : f32
    %20 = vector.broadcast %cst_17 : f32 to vector<32x1xf32>
    %21 = arith.divf %19, %20 : vector<32x1xf32>
    %22 = arith.negf %21 : vector<32x1xf32>
    %23 = math.exp %22 : vector<32x1xf32>
    %cst_18 = arith.constant 1.000000e+00 : f32
    %24 = vector.broadcast %cst_18 : f32 to vector<32x1xf32>
    %25 = arith.addf %24, %23 : vector<32x1xf32>
    %26 = arith.divf %24, %25 : vector<32x1xf32>
    %27 = vector.broadcast %26 : vector<32x1xf32> to vector<32x64xf32>
    %28 = arith.mulf %16, %27 : vector<32x64xf32>
    %cst_19 = arith.constant dense<0.000000e+00> : vector<7x64xf32>
    %29 = tpu.matmul %3, %28, %cst_19 {dimension_numbers = #tpu.dot_dimension_numbers<[1], [0], [0], [1], [0, 0, 1, 1], [], []>} : vector<7x32xf32>, vector<32x64xf32>, vector<7x64xf32> -> vector<7x64xf32>
    %cst_20 = arith.constant dense<0.000000e+00> : vector<7x256xf32>
    %30 = tpu.matmul %29, %0, %cst_20 {dimension_numbers = #tpu.dot_dimension_numbers<[1], [0], [0], [1], [0, 0, 1, 1], [], []>} : vector<7x64xf32>, vector<64x256xf32>, vector<7x256xf32> -> vector<7x256xf32>
    %cst_21 = arith.constant dense<0.000000e+00> : vector<7x256xf32>
    %31 = tpu.matmul %2, %10, %cst_21 {dimension_numbers = #tpu.dot_dimension_numbers<[1], [0], [0], [1], [0, 0, 1, 1], [], []>} : vector<7x8xf32>, vector<8x256xf32>, vector<7x256xf32> -> vector<7x256xf32>
    %32 = vector.broadcast %6 : vector<7x1xf32> to vector<7x256xf32>
    %33 = arith.addf %31, %32 : vector<7x256xf32>
    %34 = arith.addf %33, %30 : vector<7x256xf32>
    %c0_22 = arith.constant 0 : index
    %c0_23 = arith.constant 0 : index
    %c0_24 = arith.constant 0 : index
    %35 = vector.load %arg7[%c0_22, %c0_23, %c0_24] : memref<2x7x256xf32, #tpu.memory_space<vmem>>, vector<1x7x256xf32>
    %36 = vector.shape_cast %35 : vector<1x7x256xf32> to vector<7x256xf32>
    %37 = vector.shape_cast %34 : vector<7x256xf32> to vector<1x7x256xf32>
    tpu.vector_store %arg7[%c0_22, %c0_23, %c0_24], %37 {strides = array<i32>} : memref<2x7x256xf32, #tpu.memory_space<vmem>>, vector<1x7x256xf32>,
    %c1 = arith.constant 1 : index
    %c0_25 = arith.constant 0 : index
    %c0_26 = arith.constant 0 : index
    %38 = vector.load %arg1[%c1, %c0_25, %c0_26] : memref<2x16x64xf32, #tpu.memory_space<vmem>>, vector<1x16x64xf32>
    %39 = vector.shape_cast %38 : vector<1x16x64xf32> to vector<16x64xf32>
    %c1_27 = arith.constant 1 : index
    %c0_28 = arith.constant 0 : index
    %c0_29 = arith.constant 0 : index
    %40 = vector.load %arg0[%c1_27, %c0_28, %c0_29] : memref<2x8x256xf32, #tpu.memory_space<vmem>>, vector<1x8x256xf32>
    %41 = vector.shape_cast %40 : vector<1x8x256xf32> to vector<8x256xf32>
    %cst_30 = arith.constant dense<0.000000e+00> : vector<64x64xf32>
    %42 = tpu.matmul %1, %39, %cst_30 {dimension_numbers = #tpu.dot_dimension_numbers<[1], [0], [0], [1], [0, 0, 1, 1], [], []>} : vector<64x16xf32>, vector<16x64xf32>, vector<64x64xf32> -> vector<64x64xf32>
    %43 = vector.extract_strided_slice %42 {offsets = [0, 0], sizes = [32, 64], strides = [1, 1]} : vector<64x64xf32> to vector<32x64xf32>
    %44 = vector.broadcast %5 : vector<32x1xf32> to vector<32x64xf32>
    %45 = arith.addf %43, %44 : vector<32x64xf32>
    %cst_31 = arith.constant 0.000000e+00 : f32
    %46 = vector.broadcast %cst_31 : f32 to vector<32x64xf32>
    %47 = arith.maximumf %45, %46 : vector<32x64xf32>
    %48 = vector.extract_strided_slice %42 {offsets = [32, 0], sizes = [32, 64], strides = [1, 1]} : vector<64x64xf32> to vector<32x64xf32>
    %cst_32 = arith.constant dense<0.000000e+00> : vector<32xf32>
    %49 = vector.multi_reduction <add>, %48, %cst_32 [1] : vector<32x64xf32> to vector<32xf32>
    %50 = vector.shape_cast %49 : vector<32xf32> to vector<32x1xf32>
    %cst_33 = arith.constant 6.400000e+01 : f32
    %51 = vector.broadcast %cst_33 : f32 to vector<32x1xf32>
    %52 = arith.divf %50, %51 : vector<32x1xf32>
    %53 = arith.negf %52 : vector<32x1xf32>
    %54 = math.exp %53 : vector<32x1xf32>
    %cst_34 = arith.constant 1.000000e+00 : f32
    %55 = vector.broadcast %cst_34 : f32 to vector<32x1xf32>
    %56 = arith.addf %55, %54 : vector<32x1xf32>
    %57 = arith.divf %55, %56 : vector<32x1xf32>
    %58 = vector.broadcast %57 : vector<32x1xf32> to vector<32x64xf32>
    %59 = arith.mulf %47, %58 : vector<32x64xf32>
    %cst_35 = arith.constant dense<0.000000e+00> : vector<7x64xf32>
    %60 = tpu.matmul %3, %59, %cst_35 {dimension_numbers = #tpu.dot_dimension_numbers<[1], [0], [0], [1], [0, 0, 1, 1], [], []>} : vector<7x32xf32>, vector<32x64xf32>, vector<7x64xf32> -> vector<7x64xf32>
    %cst_36 = arith.constant dense<0.000000e+00> : vector<7x256xf32>
    %61 = tpu.matmul %60, %0, %cst_36 {dimension_numbers = #tpu.dot_dimension_numbers<[1], [0], [0], [1], [0, 0, 1, 1], [], []>} : vector<7x64xf32>, vector<64x256xf32>, vector<7x256xf32> -> vector<7x256xf32>
    %cst_37 = arith.constant dense<0.000000e+00> : vector<7x256xf32>
    %62 = tpu.matmul %2, %41, %cst_37 {dimension_numbers = #tpu.dot_dimension_numbers<[1], [0], [0], [1], [0, 0, 1, 1], [], []>} : vector<7x8xf32>, vector<8x256xf32>, vector<7x256xf32> -> vector<7x256xf32>
    %63 = vector.broadcast %6 : vector<7x1xf32> to vector<7x256xf32>
    %64 = arith.addf %62, %63 : vector<7x256xf32>
    %65 = arith.addf %64, %61 : vector<7x256xf32>
    %c1_38 = arith.constant 1 : index
    %c0_39 = arith.constant 0 : index
    %c0_40 = arith.constant 0 : index
    %66 = vector.load %arg7[%c1_38, %c0_39, %c0_40] : memref<2x7x256xf32, #tpu.memory_space<vmem>>, vector<1x7x256xf32>
    %67 = vector.shape_cast %66 : vector<1x7x256xf32> to vector<7x256xf32>
    %68 = vector.shape_cast %65 : vector<7x256xf32> to vector<1x7x256xf32>
    tpu.vector_store %arg7[%c1_38, %c0_39, %c0_40], %68 {strides = array<i32>} : memref<2x7x256xf32, #tpu.memory_space<vmem>>, vector<1x7x256xf32>,
    return
  }
}

</mosaic_0001>

<bundles_post_ra>
// kernel: tpu_custom_call.1
= control target key start
LH: loop header
LB: loop body
LE: loop exit
PB: predicated region body
PF: predicated region fallthrough
CT: control target
= control target key end

     0   :  { %12 = vsyncpa [#allocation3], 0  ;;  %s767_s27 = smov [#allocation2]   ;;  %s768_s29 = smov 256   ;;  %s1118_s0 = inlined_call_operand.vmem [shape: f32[2,8,256], index: 0, kind: input, shape index: {}]   ;;  %s1119_s1 = inlined_call_operand.vmem [shape: f32[2,16,64], index: 1, kind: input, shape index: {}]   ;;  %s1120_s2 = inlined_call_operand.hbm [shape: f32[64,256], index: 2, kind: input, shape index: {}]   ;;  %s1121_s3 = inlined_call_operand.vmem [shape: f32[64,16], index: 3, kind: input, shape index: {}]   ;;  %s1122_s4 = inlined_call_operand.vmem [shape: f32[7,8], index: 4, kind: input, shape index: {}]   ;;  %s1123_s5 = inlined_call_operand.vmem [shape: f32[7,32], index: 5, kind: input, shape index: {}]   ;;  %s1124_s6 = inlined_call_operand.vmem [shape: f32[39,1], index: 6, kind: input, shape index: {}]   ;;  %s1125_s7 = inlined_call_operand.vmem [shape: f32[2,7,256], index: 7, kind: output, shape index: {}]  }
   0x1   :  { %s21_s26 = sshll.u32 %s1120_s2, 4  ;;  %s23_s28 = sshll.u32 %s767_s27, 4  ;;  %s22_s26 = int_to_ptr.hbm [resolvable:$true] %s21_s26  ;;  %s24_s28 = int_to_ptr.vmem [resolvable:$true] %s23_s28 }
   0x2   :  { %s769_s30 = smov 16  }
   0x3   :  { %29 = dma.hbm_to_vmem [thread:$0]  %s22_s26, 2048, %s24_s28, [#allocation3], %s768_s29, %s768_s29, %s769_s30  }
   0x4   :  { %765 = dma.done.wait [#allocation3], 2048  }
   0x5   :  { %766 = vsyncadd [#allocation3], 4294965248  ;;  %v74_v0 = vld [vmem:[%s1119_s1 + $0x8] sm:$0xff]  ;;  %v677_v1 = vld [vmem:[%s1119_s1 + $0x18] sm:$0xff]  ;;  %vm77_vm0 = vcmask 130048   ;;  %v770_v7 = vmov 0  }
   0x6   :  { %v73_v2 = vld [vmem:[%s1119_s1] sm:$0xff]  ;;  %116 = vmatpush.msra.mxu0 %v74_v0  ;;  %415 = vmatpush.msra.mxu2 %v677_v1  ;;  %v676_v3 = vld [vmem:[%s1119_s1 + $0x10] sm:$0xff]  ;;  %v59_v5 = vld [vmem:[%s1121_s3 + $0x8] sm:$0xff]  ;;  %vm171_vm1 = vcmask 523264   ;;  %v771_v42 = vmov 64.0  }
   0x7   :  { %v58_v4 = vld [vmem:[%s1121_s3] sm:$0xff]  ;;  %v71_v6 = vld [vmem:[%s1124_s6 + $0x18] sm:$0xff]  ;;  %704 = vset.pattern.permute.xlu2 %v770_v7  ;;  %706 = vset.pattern.permute.xlu1 %v770_v7  ;;  %v60_v8 = vld [vmem:[%s1121_s3 + $0x10] sm:$0xff]  ;;  %707 = vrcp.f32 %v771_v42 }
   0x8   :  { %117 = vmatpush.msra.mxu0 %v73_v2  ;;  %416 = vmatpush.msra.mxu2 %v676_v3  ;;  %v70_v9 = vld [vmem:[%s1124_s6 + $0x10] sm:$0xff]  ;;  %v61_v10 = vld [vmem:[%s1121_s3 + $0x18] sm:$0xff]  ;;  %v62_v11 = vld [vmem:[%s1121_s3 + $0x20] sm:$0xff] }
   0x9   :  { %659 = vmatmul.msk.f32.vlgmr.msra.gmra.mxu0 %vm77_vm0, %v58_v4  ;;  %680 = vmatmul.msk.f32.vlgmr.msra.gmra.mxu2 %vm77_vm0, %v58_v4  ;;  %v63_v12 = vld [vmem:[%s1121_s3 + $0x28] sm:$0xff]  ;;  %v64_v13 = vld [vmem:[%s1121_s3 + $0x30] sm:$0xff]  ;;  %v65_v14 = vld [vmem:[%s1121_s3 + $0x38] sm:$0xff] }
   0xa   :  { %160 = vperm.xlu2 %704, %v71_v6   ;;  %705 = vset.pattern.permute.xlu0 %v770_v7  ;;  %v68_v36 = vld [vmem:[%s1124_s6] sm:$0xff]  ;;  %v69_v38 = vld [vmem:[%s1124_s6 + $0x8] sm:$0xff] }
   0xb   :  { %v72_v39 = vld [vmem:[%s1124_s6 + $0x20] sm:$0x7f] }
   0xd   :  { %v708_v43 = vpop.eup %707 }
   0xe   :  { %v185_v44 = vmul.f32 64.0, %v708_v43  ;;  %vm189_vm2 = vweird.f32 %v708_v43 }
  0x10   :  { %v186_v45 = vsub.f32 1.0, %v185_v44 }
  0x11   :  { %660 = vmatmul.msk.f32.gmra.mxu0 %vm77_vm0, %v59_v5  ;;  %681 = vmatmul.msk.f32.gmra.mxu2 %vm77_vm0, %v59_v5 }
  0x12   :  { %155 = vperm.xlu2 %704, %v70_v9   ;;  %v187_v46 = vmul.f32 %v708_v43, %v186_v45 }
  0x14   :  { %v188_v48 = vadd.f32 %v708_v43, %v187_v46 }
  0x16   :  { %v906_v49 = vsel %vm189_vm2, %v708_v43, %v188_v48 }
  0x19   :  { %661 = vmatmul.msk.f32.gmra.mxu0 %vm77_vm0, %v60_v8  ;;  %682 = vmatmul.msk.f32.gmra.mxu2 %vm77_vm0, %v60_v8 }
  0x21   :  { %662 = vmatmul.msk.f32.gmra.mxu0 %vm77_vm0, %v61_v10  ;;  %683 = vmatmul.msk.f32.gmra.mxu2 %vm77_vm0, %v61_v10 }
  0x29   :  { %663 = vmatmul.msk.f32.gmra.mxu0 %vm77_vm0, %v62_v11  ;;  %684 = vmatmul.msk.f32.gmra.mxu2 %vm77_vm0, %v62_v11 }
  0x31   :  { %664 = vmatmul.msk.f32.gmra.mxu0 %vm77_vm0, %v63_v12  ;;  %685 = vmatmul.msk.f32.gmra.mxu2 %vm77_vm0, %v63_v12 }
  0x39   :  { %665 = vmatmul.msk.f32.gmra.mxu0 %vm77_vm0, %v64_v13  ;;  %686 = vmatmul.msk.f32.gmra.mxu2 %vm77_vm0, %v64_v13 }
  0x41   :  { %666 = vmatmul.msk.f32.gmra.mxu0 %vm77_vm0, %v65_v14  ;;  %687 = vmatmul.msk.f32.gmra.mxu2 %vm77_vm0, %v65_v14 }
  0x64   :  { %v910_v54 = vpop.permute.xlu2 %160 }
  0x6c   :  { %v913_v60 = vpop.permute.xlu2 %155 }
  0x86   :  { %v873_v15 = vpop.f32.mrf.mxu0 }
  0x8c   :  { %v875_v16 = vpop.f32.mrf.mxu2 }
  0x8e   :  { %v877_v17 = vpop.f32.mrf.mxu0 }
  0x94   :  { %v879_v18 = vpop.f32.mrf.mxu2 }
  0x96   :  { %v881_v19 = vpop.f32.mrf.mxu0 }
  0x9c   :  { %v883_v20 = vpop.f32.mrf.mxu2 }
  0x9e   :  { %v885_v21 = vpop.f32.mrf.mxu0 }
  0xa4   :  { %v887_v22 = vpop.f32.mrf.mxu2 }
  0xa6   :  { %v131_v23 = vpop.f32.mrf.mxu0 }
  0xa7   :  { %v172_v24 = vsel %vm171_vm1, %v131_v23, 0.0 }
  0xa8   :  { %173 = vadd.xlane.f32.xlu1 %v172_v24 }
  0xac   :  { %v430_v25 = vpop.f32.mrf.mxu2 }
  0xad   :  { %v450_v37 = vsel %vm171_vm1, %v430_v25, 0.0 }
  0xae   :  { %v134_v26 = vpop.f32.mrf.mxu0 }
  0xaf   :  { %v175_v27 = vsel %vm171_vm1, %v134_v26, 0.0  ;;  %v165_v26 = vadd.f32 %v913_v60, %v881_v19 }
  0xb0   :  { %176 = vadd.xlane.f32.xlu1 %v175_v27  ;;  %v166_v27 = vadd.f32 %v910_v54, %v885_v21 }
  0xb4   :  { %v433_v28 = vpop.f32.mrf.mxu2 }
  0xb5   :  { %v453_v41 = vsel %vm171_vm1, %v433_v28, 0.0 }
  0xb6   :  { %v137_v29 = vpop.f32.mrf.mxu0 }
  0xb7   :  { %v178_v30 = vsel %vm171_vm1, %v137_v29, 0.0 }
  0xb8   :  { %179 = vadd.xlane.f32.xlu0 %v178_v30 }
  0xbc   :  { %v436_v31 = vpop.f32.mrf.mxu2 }
  0xbd   :  { %v456_v40 = vsel %vm171_vm1, %v436_v31, 0.0 }
  0xbe   :  { %v140_v32 = vpop.f32.mrf.mxu0 }
  0xbf   :  { %v181_v33 = vsel %vm171_vm1, %v140_v32, 0.0 }
  0xc0   :  { %182 = vadd.xlane.f32.xlu0 %v181_v33 }
  0xc4   :  { %v439_v34 = vpop.f32.mrf.mxu2 }
  0xc5   :  { %v459_v35 = vsel %vm171_vm1, %v439_v34, 0.0  ;;  %v169_v34 = vmax.f32 %v165_v26, 0.0 }
  0xc6   :  { %460 = vadd.xlane.f32.xlu2 %v459_v35  ;;  %v170_v35 = vmax.f32 %v166_v27, 0.0 }
  0xc9   :  { %145 = vperm.xlu1 %706, %v68_v36  }
  0xce   :  { %451 = vadd.xlane.f32.xlu2 %v450_v37 }
  0xd4   :  { %150 = vperm.xlu0 %705, %v69_v38  }
  0xe6   :  { %344 = vperm.xlu2 %704, %v72_v39  }
  0xf3   :  { %457 = vadd.xlane.f32.xlu1 %v456_v40 }
  0xfe   :  { %454 = vadd.xlane.f32.xlu0 %v453_v41 }
 0x11b   :  { %v174_v47 = vpop.xlane.xlu1 %173 }
 0x11c   :  { %v191_v52 = vmul.f32 %v906_v49, %v174_v47 }
 0x11e   :  { %v667_v55 = vmul.f32 -1.442695, %v191_v52 }
 0x123   :  { %v177_v50 = vpop.xlane.xlu1 %176 }
 0x124   :  { %v192_v51 = vmul.f32 %v906_v49, %v177_v50 }
 0x126   :  { %v668_v53 = vmul.f32 -1.442695, %v192_v51 }
 0x128   :  { %709 = vpow2.f32 %v668_v53 }
 0x129   :  { %711 = vpow2.f32 %v667_v55 }
 0x12b   :  { %v180_v56 = vpop.xlane.xlu0 %179 }
 0x12c   :  { %v193_v57 = vmul.f32 %v906_v49, %v180_v56 }
 0x12e   :  { %v669_v58 = vmul.f32 -1.442695, %v193_v57  ;;  %v710_v59 = vpop.eup %709 }
 0x12f   :  { %v712_v61 = vpop.eup %711  ;;  %v915_v62 = vadd.f32 1.0, %v710_v59 }
 0x130   :  { %713 = vpow2.f32 %v669_v58  ;;  %v918_v2 = vadd.f32 1.0, %v712_v61 }
 0x131   :  { %715 = vrcp.f32 %v915_v62  ;;  %vm231_vm8 = vweird.f32 %v915_v62  ;;  %v235_v47 = vand.u32 2147483647, %v915_v62  ;;  %v237_v55 = vand.u32 2147483648, %v915_v62 }
 0x132   :  { %vm216_vm15 = vweird.f32 %v918_v2 }
 0x133   :  { %v183_v63 = vpop.xlane.xlu0 %182  ;;  %vm236_vm2 = vcmp.eq.f32.partialorder %v235_v47, 8.507059e+37 }
 0x134   :  { %v194_v0 = vmul.f32 %v906_v49, %v183_v63 }
 0x136   :  { %v714_v1 = vpop.eup %713  ;;  %v670_v3 = vmul.f32 -1.442695, %v194_v0  ;;  %v222_v0 = vand.u32 2147483648, %v918_v2 }
 0x137   :  { %v921_v4 = vadd.f32 1.0, %v714_v1  ;;  %v926_v8 = vpop.eup %715 }
 0x138   :  { %717 = vpow2.f32 %v670_v3  ;;  %v227_v14 = vmul.f32 %v926_v8, %v915_v62  ;;  %vm232_vm9 = vweird.f32 %v926_v8  ;;  %v238_v62 = vor.u32 1.1754944e-38, %v237_v55  ;;  %v1037_v55 = vld [vmem:[#allocation2 + $0x60] sm:$0xff] }
 0x139   :  { %719 = vrcp.f32 %v921_v4  ;;  %v461_v5 = vpop.xlane.xlu2 %460  ;;  %vm246_vm5 = vweird.f32 %v921_v4  ;;  %v252_v39 = vand.u32 2147483648, %v921_v4  ;;  %v250_v43 = vand.u32 2147483647, %v921_v4  ;;  %vm974_vm14 = vmor %vm231_vm8, %vm232_vm9 }
 0x13a   :  { %721 = vrcp.f32 %v918_v2  ;;  %v465_v6 = vmul.f32 %v461_v5, %v906_v49  ;;  %v228_v28 = vsub.f32 1.0, %v227_v14 }
 0x13b   :  { %v950_v44 = vpop.permute.xlu1 %145  ;;  %v253_v53 = vor.u32 1.1754944e-38, %v252_v39  ;;  %vm251_vm13 = vcmp.eq.f32.partialorder %v250_v43, 8.507059e+37  ;;  %v1027_v43 = vld [vmem:[#allocation2 + $0x8] sm:$0xff] }
 0x13c   :  { %v691_v7 = vmul.f32 -1.442695, %v465_v6  ;;  %v229_v36 = vmul.f32 %v926_v8, %v228_v28  ;;  %v163_v58 = vadd.f32 %v950_v44, %v873_v15  ;;  %v1003_v28 = vld [vmem:[#allocation2 + $0x58] sm:$0xff] }
 0x13e   :  { %v718_v9 = vpop.eup %717  ;;  %723 = vpow2.f32 %v691_v7  ;;  %v230_v46 = vadd.f32 %v926_v8, %v229_v36  ;;  %v167_v6 = vmax.f32 %v163_v58, 0.0  ;;  %v1043_v58 = vld [vmem:[#allocation2 + $0x40] sm:$0xff] }
 0x13f   :  { %v720_v10 = vpop.eup %719  ;;  %v210_v11 = vadd.f32 1.0, %v718_v9 }
 0x140   :  { %v928_v12 = vpop.eup %721  ;;  %v242_v13 = vmul.f32 %v720_v10, %v921_v4  ;;  %vm247_vm4 = vweird.f32 %v720_v10  ;;  %v234_v15 = vsel %vm974_vm14, %v926_v8, %v230_v46  ;;  %v220_v4 = vand.u32 2147483647, %v918_v2 }
 0x141   :  { %725 = vrcp.f32 %v210_v11  ;;  %v212_v24 = vmul.f32 %v928_v12, %v918_v2  ;;  %vm217_vm3 = vweird.f32 %v928_v12  ;;  %v267_v21 = vand.u32 2147483648, %v210_v11  ;;  %vm952_vm7 = vmor %vm246_vm5, %vm247_vm4 }
 0x142   :  { %v243_v23 = vsub.f32 1.0, %v242_v13  ;;  %v265_v42 = vand.u32 2147483647, %v210_v11  ;;  %vm261_vm10 = vweird.f32 %v210_v11  ;;  %vm218_vm0 = vmor %vm216_vm15, %vm217_vm3  ;;  %vm221_vm4 = vcmp.eq.f32.partialorder %v220_v4, 8.507059e+37 }
 0x143   :  { %v213_v32 = vsub.f32 1.0, %v212_v24  ;;  %v268_v52 = vor.u32 1.1754944e-38, %v267_v21  ;;  %vm275_vm3 = vcmask 261120   ;;  %v994_v24 = vld [vmem:[#allocation2 + $0x78] sm:$0xff] }
 0x144   :  { %v724_v25 = vpop.eup %723  ;;  %v244_v30 = vmul.f32 %v720_v10, %v243_v23  ;;  %vm266_vm12 = vcmp.eq.f32.partialorder %v265_v42, 8.507059e+37  ;;  %v992_v23 = vld [vmem:[%s1123_s5] sm:$0x7f] }
 0x145   :  { %v939_v29 = vadd.f32 1.0, %v724_v25  ;;  %v214_v40 = vmul.f32 %v928_v12, %v213_v32  ;;  %v452_v25 = vpop.xlane.xlu2 %451 }
 0x146   :  { %v245_v19 = vadd.f32 %v720_v10, %v244_v30  ;;  %v944_v38 = vpop.permute.xlu0 %150  ;;  %v462_v27 = vmul.f32 %v452_v25, %v906_v49 }
 0x147   :  { %v726_v31 = vpop.eup %725  ;;  %727 = vrcp.f32 %v939_v29  ;;  %v164_v48 = vadd.f32 %v944_v38, %v877_v17  ;;  %v215_v56 = vadd.f32 %v928_v12, %v214_v40  ;;  %vm532_vm5 = vweird.f32 %v939_v29 }
 0x148   :  { %v257_v33 = vmul.f32 %v726_v31, %v210_v11  ;;  %vm262_vm6 = vweird.f32 %v726_v31  ;;  %v249_v51 = vsel %vm952_vm7, %v720_v10, %v245_v19  ;;  %v239_v10 = vsel %vm236_vm2, %v238_v62, %v234_v15  ;;  %v1019_v19 = vld [vmem:[#allocation2 + $0x28] sm:$0xff] }
 0x149   :  { %vm263_vm11 = vmor %vm261_vm10, %vm262_vm6  ;;  %v254_v61 = vsel %vm251_vm13, %v253_v53, %v249_v51  ;;  %v168_v1 = vmax.f32 %v164_v48, 0.0  ;;  %v219_v9 = vsel %vm218_vm0, %v928_v12, %v215_v56  ;;  %v223_v11 = vor.u32 1.1754944e-38, %v222_v0  ;;  %v998_v12 = vld [vmem:[#allocation2 + $0x68] sm:$0xff]  ;;  %v1035_v53 = vld [vmem:[#allocation2 + $0x70] sm:$0xff] }
 0x14a   :  { %v258_v37 = vsub.f32 1.0, %v257_v33  ;;  %v273_v7 = vmul.f32 %v254_v61, %v169_v34  ;;  %v538_v30 = vand.u32 2147483648, %v939_v29  ;;  %v536_v33 = vand.u32 2147483647, %v939_v29  ;;  %310 = vmatpush.msra.mxu1 %v1035_v53  ;;  %v1040_v56 = vld [vmem:[#allocation2 + $0x50] sm:$0xff] }
 0x14b   :  { %v272_v13 = vmul.f32 %v239_v10, %v168_v1  ;;  %v224_v2 = vsel %vm221_vm4, %v223_v11, %v219_v9  ;;  %v688_v34 = vmul.f32 -1.442695, %v462_v27  ;;  %v1050_v1 = vld [vmem:[#allocation2 + $0x20] sm:$0xff]  ;;  %v444_v62 = vadd.f32 %v883_v20, %v913_v60 }
 0x14c   :  { %v259_v41 = vmul.f32 %v726_v31, %v258_v37  ;;  %v271_v14 = vmul.f32 %v224_v2, %v167_v6  ;;  %v539_v36 = vor.u32 1.1754944e-38, %v538_v30  ;;  %v445_v37 = vadd.f32 %v887_v22, %v910_v54  ;;  %311 = vmatpush.msra.mxu1 %v1037_v55 }
 0x14d   :  { %v966_v57 = vpop.eup %727  ;;  %vm537_vm8 = vcmp.eq.f32.partialorder %v536_v33, 8.507059e+37  ;;  %729 = vpow2.f32 %v688_v34  ;;  %v448_v11 = vmax.f32 %v444_v62, 0.0  ;;  %v443_v34 = vadd.f32 %v879_v18, %v944_v38  ;;  %v42_v18 = vld [vmem:[#allocation2] sm:$0xff]  ;;  %v76_v38 = vld [vmem:[%s1118_s0 + $0x8] sm:$0xff] }
 0x14e   :  { %v260_v50 = vadd.f32 %v726_v31, %v259_v41  ;;  %v528_v5 = vmul.f32 %v966_v57, %v939_v29  ;;  %vm533_vm6 = vweird.f32 %v966_v57  ;;  %v1023_v29 = vld [vmem:[#allocation2 + $0x18] sm:$0xff]  ;;  %v449_v41 = vmax.f32 %v445_v37, 0.0  ;;  %312 = vmatpush.msra.mxu1 %v1040_v56 }
 0x14f   :  { %vm534_vm7 = vmor %vm532_vm5, %vm533_vm6  ;;  %v442_v37 = vadd.f32 %v875_v16, %v950_v44  ;;  %v75_v16 = vld [vmem:[%s1118_s0] sm:$0xff] }
 0x150   :  { %v264_v59 = vsel %vm263_vm11, %v726_v31, %v260_v50  ;;  %v529_v8 = vsub.f32 1.0, %v528_v5  ;;  %v1009_v31 = vld [vmem:[#allocation2 + $0x48] sm:$0xff]  ;;  %313 = vmatpush.msra.mxu1 %v1043_v58  ;;  %v1053_v5 = vld [vmem:[#allocation2 + $0x10] sm:$0xff] }
 0x151   :  { %v269_v17 = vsel %vm266_vm12, %v268_v52, %v264_v59 }
 0x152   :  { %v274_v3 = vmul.f32 %v269_v17, %v170_v35  ;;  %v530_v26 = vmul.f32 %v966_v57, %v529_v8  ;;  %v1014_v35 = vld [vmem:[#allocation2 + $0x38] sm:$0xff] }
 0x153   :  { %v730_v45 = vpop.eup %729 }
 0x154   :  { %291 = vmatpush.msra.mxu3 %v274_v3  ;;  %v531_v32 = vadd.f32 %v966_v57, %v530_v26  ;;  %v1031_v46 = vadd.f32 1.0, %v730_v45 }
 0x156   :  { %292 = vmatpush.msra.mxu3 %v273_v7  ;;  %v535_v21 = vsel %vm534_vm7, %v966_v57, %v531_v32  ;;  %vm487_vm13 = vweird.f32 %v1031_v46  ;;  %v491_v27 = vand.u32 2147483647, %v1031_v46  ;;  %v493_v30 = vand.u32 2147483648, %v1031_v46 }
 0x157   :  { %v540_v40 = vsel %vm537_vm8, %v539_v36, %v535_v21  ;;  %vm347_vm7 = vcmask 64512  }
 0x158   :  { %293 = vmatpush.msra.mxu3 %v272_v13  ;;  %v545_v54 = vmul.f32 %v540_v40, %v449_v41  ;;  %vm492_vm6 = vcmp.eq.f32.partialorder %v491_v27, 8.507059e+37 }
 0x15a   :  { %294 = vmatpush.msra.mxu3 %v271_v14 }
 0x15b   :  { %671 = vmatmul.msk.f32.vlgmr.msra.gmra.mxu3 %vm275_vm3, %v992_v23 }
 0x15c   :  { %330 = vmatpush.msrb.mxu3 %v994_v24 }
 0x15e   :  { %331 = vmatpush.msrb.mxu3 %v998_v12 }
 0x160   :  { %332 = vmatpush.msrb.mxu3 %v1003_v28 }
 0x162   :  { %333 = vmatpush.msrb.mxu3 %v1009_v31 }
 0x164   :  { %334 = vmatpush.msrb.mxu3 %v1014_v35 }
 0x166   :  { %335 = vmatpush.msrb.mxu3 %v1019_v19  ;;  %v458_v39 = vpop.xlane.xlu1 %457 }
 0x167   :  { %v464_v42 = vmul.f32 %v458_v39, %v906_v49  ;;  %v494_v39 = vor.u32 1.1754944e-38, %v493_v30 }
 0x168   :  { %336 = vmatpush.msrb.mxu3 %v1023_v29 }
 0x169   :  { %v690_v22 = vmul.f32 -1.442695, %v464_v42  ;;  %v447_v42 = vmax.f32 %v443_v34, 0.0 }
 0x16a   :  { %337 = vmatpush.msrb.mxu3 %v1027_v43 }
 0x16b   :  { %731 = vpow2.f32 %v690_v22 }
 0x16c   :  { %558 = vmatpush.msra.mxu3 %v545_v54  ;;  %733 = vrcp.f32 %v1031_v46 }
 0x171   :  { %v732_v47 = vpop.eup %731  ;;  %v455_v48 = vpop.xlane.xlu0 %454 }
 0x172   :  { %v480_v50 = vadd.f32 1.0, %v732_v47  ;;  %v463_v51 = vmul.f32 %v455_v48, %v906_v49  ;;  %v734_v57 = vpop.eup %733  ;;  %v1046_v49 = vld [vmem:[#allocation2 + $0x30] sm:$0xff] }
 0x173   :  { %v483_v17 = vmul.f32 %v734_v57, %v1031_v46  ;;  %314 = vmatpush.msra.mxu1 %v1046_v49  ;;  %vm488_vm14 = vweird.f32 %v734_v57  ;;  %v446_v46 = vmax.f32 %v442_v37, 0.0 }
 0x174   :  { %735 = vrcp.f32 %v480_v50  ;;  %v689_v52 = vmul.f32 -1.442695, %v463_v51  ;;  %vm517_vm9 = vweird.f32 %v480_v50  ;;  %v523_v0 = vand.u32 2147483648, %v480_v50  ;;  %vm489_vm2 = vmor %vm487_vm13, %vm488_vm14 }
 0x175   :  { %v521_v4 = vand.u32 2147483647, %v480_v50  ;;  %v484_v7 = vsub.f32 1.0, %v483_v17  ;;  %315 = vmatpush.msra.mxu1 %v1050_v1 }
 0x176   :  { %737 = vpow2.f32 %v689_v52  ;;  %v524_v9 = vor.u32 1.1754944e-38, %v523_v0 }
 0x177   :  { %vm522_vm12 = vcmp.eq.f32.partialorder %v521_v4, 8.507059e+37  ;;  %316 = vmatpush.msra.mxu1 %v1053_v5  ;;  %v485_v8 = vmul.f32 %v734_v57, %v484_v7 }
 0x179   :  { %v486_v60 = vadd.f32 %v734_v57, %v485_v8  ;;  %317 = vmatpush.msra.mxu1 %v42_v18 }
 0x17a   :  { %v736_v59 = vpop.eup %735 }
 0x17b   :  { %v513_v61 = vmul.f32 %v736_v59, %v480_v50  ;;  %vm518_vm10 = vweird.f32 %v736_v59  ;;  %v490_v41 = vsel %vm489_vm2, %v734_v57, %v486_v60  ;;  %366 = vmatpush.msrb.mxu1 %v75_v16  ;;  %v66_v50 = vld [vmem:[%s1122_s4] sm:$0x7f] }
 0x17c   :  { %v738_v63 = vpop.eup %737  ;;  %vm519_vm11 = vmor %vm517_vm9, %vm518_vm10  ;;  %v495_v45 = vsel %vm492_vm6, %v494_v39, %v490_v41 }
 0x17d   :  { %v479_v3 = vadd.f32 1.0, %v738_v63  ;;  %v514_v15 = vsub.f32 1.0, %v513_v61  ;;  %v542_v48 = vmul.f32 %v495_v45, %v446_v46 }
 0x17f   :  { %739 = vrcp.f32 %v479_v3  ;;  %v515_v6 = vmul.f32 %v736_v59, %v514_v15  ;;  %v508_v20 = vand.u32 2147483648, %v479_v3  ;;  %vm502_vm15 = vweird.f32 %v479_v3 }
 0x180   :  { %v506_v33 = vand.u32 2147483647, %v479_v3 }
 0x181   :  { %v516_v10 = vadd.f32 %v736_v59, %v515_v6  ;;  %v509_v21 = vor.u32 1.1754944e-38, %v508_v20 }
 0x182   :  { %vm507_vm5 = vcmp.eq.f32.partialorder %v506_v33, 8.507059e+37 }
 0x183   :  { %v520_v13 = vsel %vm519_vm11, %v736_v59, %v516_v10 }
 0x184   :  { %v525_v2 = vsel %vm522_vm12, %v524_v9, %v520_v13 }
 0x185   :  { %v740_v14 = vpop.eup %739  ;;  %v544_v25 = vmul.f32 %v525_v2, %v448_v11 }
 0x186   :  { %v498_v26 = vmul.f32 %v740_v14, %v479_v3  ;;  %vm503_vm0 = vweird.f32 %v740_v14 }
 0x187   :  { %559 = vmatpush.msra.mxu3 %v544_v25  ;;  %vm504_vm4 = vmor %vm502_vm15, %vm503_vm0 }
 0x188   :  { %v499_v32 = vsub.f32 1.0, %v498_v26 }
 0x18a   :  { %v500_v36 = vmul.f32 %v740_v14, %v499_v32 }
 0x18c   :  { %v501_v40 = vadd.f32 %v740_v14, %v500_v36 }
 0x18e   :  { %v505_v22 = vsel %vm504_vm4, %v740_v14, %v501_v40 }
 0x18f   :  { %v510_v54 = vsel %vm507_vm5, %v509_v21, %v505_v22 }
 0x190   :  { %v543_v47 = vmul.f32 %v510_v54, %v447_v42 }
 0x192   :  { %560 = vmatpush.msra.mxu3 %v543_v47 }
 0x194   :  { %561 = vmatpush.msra.mxu3 %v542_v48 }
 0x1de   :  { %v296_v44 = vpop.f32.mrf.mxu3 }
 0x1df   :  { %672 = vmatmul.msk.f32.vlgmr.msra.gmra.mxu1 %vm171_vm1, %v296_v44  ;;  %673 = vmatmul.msk.f32.vlgmr.msrb.gmra.mxu3 %vm171_vm1, %v296_v44 }
 0x1e0   :  { %386 = vmatpush.msra.mxu1 %v76_v38  ;;  %597 = vmatpush.msrb.mxu3 %v994_v24  ;;  %v678_v24 = vld [vmem:[%s1118_s0 + $0x10] sm:$0xff] }
 0x1e2   :  { %598 = vmatpush.msrb.mxu3 %v998_v12 }
 0x1e4   :  { %599 = vmatpush.msrb.mxu3 %v1003_v28 }
 0x1e6   :  { %600 = vmatpush.msrb.mxu3 %v1009_v31  ;;  %v345_v31 = vpop.permute.xlu2 %344 }
 0x1e7   :  { %674 = vmatmul.msk.f32.vlgmr.msrb.gmra.mxu1 %vm347_vm7, %v66_v50  ;;  %692 = vmatmul.msk.f32.vlgmr.msra.gmra.mxu3 %vm275_vm3, %v992_v23  ;;  %v679_v23 = vld [vmem:[%s1118_s0 + $0x18] sm:$0xff] }
 0x1e8   :  { %577 = vmatpush.msrb.mxu1 %v1035_v53  ;;  %601 = vmatpush.msrb.mxu3 %v1014_v35 }
 0x1ea   :  { %578 = vmatpush.msrb.mxu1 %v1037_v55  ;;  %602 = vmatpush.msrb.mxu3 %v1019_v19 }
 0x1ec   :  { %579 = vmatpush.msrb.mxu1 %v1040_v56  ;;  %603 = vmatpush.msrb.mxu3 %v1023_v29 }
 0x1ee   :  { %580 = vmatpush.msrb.mxu1 %v1043_v58  ;;  %604 = vmatpush.msrb.mxu3 %v1027_v43 }
 0x1ef   :  { %675 = vmatmul.msk.f32.vlgmr.msra.gmra.mxu1 %vm347_vm7, %v66_v50 }
 0x1f0   :  { %581 = vmatpush.msrb.mxu1 %v1046_v49  ;;  %644 = vmatpush.msra.mxu3 %v679_v23 }
 0x1f2   :  { %582 = vmatpush.msrb.mxu1 %v1050_v1 }
 0x1f4   :  { %583 = vmatpush.msrb.mxu1 %v1053_v5 }
 0x1f6   :  { %584 = vmatpush.msrb.mxu1 %v42_v18 }
 0x1f8   :  { %624 = vmatpush.msra.mxu1 %v678_v24 }
 0x25c   :  { %v319_v12 = vpop.f32.mrf.mxu1 }
 0x262   :  { %v339_v28 = vpop.f32.mrf.mxu3 }
 0x264   :  { %v368_v35 = vpop.f32.mrf.mxu1 }
 0x265   :  { %v369_v19 = vadd.f32 %v368_v35, %v345_v31 }
 0x267   :  { %v391_v29 = vadd.f32 %v369_v19, %v319_v12 }
 0x269   :  { %393 = vst [vmem:[%s1125_s7] sm:$0x7f] %v391_v29 }
 0x26a   :  { %v563_v43 = vpop.f32.mrf.mxu3 }
 0x26b   :  { %693 = vmatmul.msk.f32.vlgmr.msrb.gmra.mxu1 %vm171_vm1, %v563_v43  ;;  %694 = vmatmul.msk.f32.vlgmr.msrb.gmra.mxu3 %vm171_vm1, %v563_v43 }
 0x26c   :  { %v388_v51 = vpop.f32.mrf.mxu1 }
 0x26d   :  { %v389_v52 = vadd.f32 %v388_v51, %v345_v31 }
 0x26f   :  { %v392_v53 = vadd.f32 %v389_v52, %v339_v28 }
 0x271   :  { %394 = vst [vmem:[%s1125_s7 + $0x8] sm:$0x7f] %v392_v53 }
 0x273   :  { %695 = vmatmul.msk.f32.vlgmr.msra.gmra.mxu1 %vm347_vm7, %v66_v50  ;;  %696 = vmatmul.msk.f32.vlgmr.msra.gmra.mxu3 %vm347_vm7, %v66_v50 }
 0x2e8   :  { %v586_v55 = vpop.f32.mrf.mxu1 }
 0x2ee   :  { %v606_v56 = vpop.f32.mrf.mxu3 }
 0x2f0   :  { %v626_v57 = vpop.f32.mrf.mxu1 }
 0x2f1   :  { %v627_v58 = vadd.f32 %v626_v57, %v345_v31 }
 0x2f3   :  { %v649_v59 = vadd.f32 %v627_v58, %v586_v55 }
 0x2f5   :  { %697 = vst [vmem:[%s1125_s7 + $0x10] sm:$0x7f] %v649_v59 }
 0x2f6   :  { %v646_v49 = vpop.f32.mrf.mxu3 }
 0x2f7   :  { %v647_v17 = vadd.f32 %v646_v49, %v345_v31 }
 0x2f9   :  { %v650_v61 = vadd.f32 %v647_v17, %v606_v56 }
 0x2fb   :  { %698 = vst [vmem:[%s1125_s7 + $0x18] sm:$0x7f] %v650_v61 }
 0x2fc   :  { %658 = vsyncpa [#allocation3], 1 }

</bundles_post_ra>
